<compile_context>
chip_gen: v5e
topology: v5e:2x2
jax: 0.10.0
libtpu: 0.0.40
codegen_flags: <defaults>
</compile_context>

<pallas_src>
import jax
import jax.numpy as jnp
from jax.experimental import pallas as pl
from jax.experimental.pallas import tpu as pltpu

HIDDEN = 32        # hidden_size (concat of two H/2 halves, per module as written)
NUM_CLASSES = 8
LN_EPS = 1e-5
PACK = 4           # tokens packed per 128-lane row (PACK * HIDDEN == 128)
TILE_TOKENS = 2048 # tokens per grid step (=> 512 packed rows per tile)


def _round_up(x, m):
    return ((x + m - 1) // m) * m


def _block_diag(block, n):
    r, c = block.shape
    out = jnp.zeros((n * r, n * c), block.dtype)
    for i in range(n):
        out = out.at[i * r:(i + 1) * r, i * c:(i + 1) * c].set(block)
    return out


def _pooler_end_logits_kernel(hs_ref, sp_ref, w0t_ref, w0b_ref, b0_ref,
                              a_ref, g_ref, beta_ref, w1_ref, b1_ref, o_ref):
    # dense_0 on packed rows: (TMp, 4*H/2) @ (4*H/2, 4*H) twice (split W0,
    # block-diagonal), no pre-concatenated activation needed.
    hs = hs_ref[...]
    sp = sp_ref[...]
    h = (jnp.dot(hs, w0t_ref[...], preferred_element_type=jnp.float32)
         + jnp.dot(sp, w0b_ref[...], preferred_element_type=jnp.float32)
         + b0_ref[...])

    # activation: tanh (EUP), full 128-lane utilization thanks to packing
    h = jnp.tanh(h)

    # LayerNorm per token = per 32-lane segment.  a_ref is the block-diagonal
    # averaging matrix (1/H inside each 32x32 segment), so h @ A broadcasts the
    # per-segment mean back across that segment's lanes (MXU, keeps VPU free).
    mean = jnp.dot(h, a_ref[...], preferred_element_type=jnp.float32)
    d = h - mean
    var = jnp.dot(d * d, a_ref[...], preferred_element_type=jnp.float32)
    h = d * jax.lax.rsqrt(var + LN_EPS)
    h = h * g_ref[...] + beta_ref[...]

    # dense_1 (block-diagonal): (TMp, 4*H) @ (4*H, 4*C) + (1, 4*C)
    o = jnp.dot(h, w1_ref[...], preferred_element_type=jnp.float32) + b1_ref[...]
    o_ref[...] = o.astype(o_ref.dtype)


def _prepare_packed_params(params, pack):
    """Split W0, build block-diagonal weight tiles and 4x-tiled biases."""
    w0, b0, gamma, beta, w1, b1 = params
    H = w0.shape[0]
    Hh = H // 2
    w0_top = w0[:Hh, :]          # multiplies hidden_states features
    w0_bot = w0[Hh:, :]          # multiplies start_positions features
    w0t_bd = _block_diag(w0_top, pack)      # (pack*Hh, pack*H)
    w0b_bd = _block_diag(w0_bot, pack)      # (pack*Hh, pack*H)
    w1_bd = _block_diag(w1, pack)           # (pack*H,  pack*C)
    b0_t = jnp.tile(b0, (1, pack))
    g_t = jnp.tile(gamma, (1, pack))
    be_t = jnp.tile(beta, (1, pack))
    b1_t = jnp.tile(b1, (1, pack))
    seg = jnp.arange(pack * H) // H
    avg = (seg[:, None] == seg[None, :]).astype(jnp.float32) / H  # (pack*H, pack*H)
    return w0t_bd, w0b_bd, b0_t, avg, g_t, be_t, w1_bd, b1_t


def pooler_end_logits(hidden_states, start_positions, params, *,
                      tile_tokens=TILE_TOKENS):
    """hidden_states, start_positions: (B, S, H/2). Returns (B, S, C)."""
    w0 = params[0]
    H = w0.shape[0]
    Hh = H // 2
    C = params[4].shape[1]
    B, S, _ = hidden_states.shape
    M = B * S

    # Pad the token axis so it packs into groups of PACK and 8-row sublanes.
    m_pad = _round_up(M, PACK * 8)
    hs2 = hidden_states.reshape(M, Hh)
    sp2 = start_positions.reshape(M, Hh)
    if m_pad != M:
        hs2 = jnp.pad(hs2, ((0, m_pad - M), (0, 0)))
        sp2 = jnp.pad(sp2, ((0, m_pad - M), (0, 0)))

    # Free (contiguous) reshape: PACK tokens per lane-row.
    Mp = m_pad // PACK
    hs_p = hs2.reshape(Mp, PACK * Hh)
    sp_p = sp2.reshape(Mp, PACK * Hh)

    tmp = min(max(tile_tokens // PACK, 8), Mp)   # packed rows per tile (mult of 8)
    grid_m = pl.cdiv(Mp, tmp)

    (w0t_bd, w0b_bd, b0_t, avg, g_t, be_t,
     w1_bd, b1_t) = _prepare_packed_params(params, PACK)

    const = lambda i: (0, 0)
    out = pl.pallas_call(
        _pooler_end_logits_kernel,
        out_shape=jax.ShapeDtypeStruct((Mp, PACK * C), jnp.float32),
        grid_spec=pltpu.PrefetchScalarGridSpec(
            num_scalar_prefetch=0,
            grid=(grid_m,),
            in_specs=[
                pl.BlockSpec((tmp, PACK * Hh), lambda i: (i, 0)),   # hs (packed)
                pl.BlockSpec((tmp, PACK * Hh), lambda i: (i, 0)),   # sp (packed)
                pl.BlockSpec((PACK * Hh, PACK * H), const),         # W0_top block-diag
                pl.BlockSpec((PACK * Hh, PACK * H), const),         # W0_bot block-diag
                pl.BlockSpec((1, PACK * H), const),                 # b0 tiled
                pl.BlockSpec((PACK * H, PACK * H), const),          # segment-mean matrix
                pl.BlockSpec((1, PACK * H), const),                 # LN gamma tiled
                pl.BlockSpec((1, PACK * H), const),                 # LN beta tiled
                pl.BlockSpec((PACK * H, PACK * C), const),          # W1 block-diag
                pl.BlockSpec((1, PACK * C), const),                 # b1 tiled
            ],
            out_specs=pl.BlockSpec((tmp, PACK * C), lambda i: (i, 0)),
        ),
        compiler_params=pltpu.CompilerParams(
            dimension_semantics=("parallel",)),   # shard token tiles across TCs (v7x)
    )(hs_p, sp_p, w0t_bd, w0b_bd, b0_t, avg, g_t, be_t, w1_bd, b1_t)

    return out.reshape(m_pad, C)[:M].reshape(B, S, C)


def init_params(key, hidden_size, num_classes):
    k0, k1, k2, k3 = jax.random.split(key, 4)
    # PyTorch Linear stores weight as (out, in); we keep the (in, out)
    # transpose so the kernel computes x @ W directly.
    w0 = jax.random.normal(k0, (hidden_size, hidden_size), jnp.float32) * 0.05
    b0 = jax.random.normal(k1, (1, hidden_size), jnp.float32) * 0.01
    gamma = jnp.ones((1, hidden_size), jnp.float32)
    beta = jnp.zeros((1, hidden_size), jnp.float32)
    w1 = jax.random.normal(k2, (hidden_size, num_classes), jnp.float32) * 0.05
    b1 = jax.random.normal(k3, (1, num_classes), jnp.float32) * 0.01
    return (w0, b0, gamma, beta, w1, b1)


def _reference(hidden_states, start_positions, params):
    w0, b0, gamma, beta, w1, b1 = params
    x = jnp.concatenate([hidden_states, start_positions], axis=-1)
    h = x @ w0 + b0
    h = jnp.tanh(h)
    mean = jnp.mean(h, axis=-1, keepdims=True)
    var = jnp.mean(jnp.square(h - mean), axis=-1, keepdims=True)
    h = (h - mean) * jax.lax.rsqrt(var + LN_EPS)
    h = h * gamma + beta
    return h @ w1 + b1


if __name__ == "__main__":
    key = jax.random.PRNGKey(0)
    kp, kh, ks = jax.random.split(key, 3)

    B, S = 2, 8
    half = HIDDEN // 2
    hidden_states = jax.random.normal(kh, (B, S, half), jnp.float32)
    start_positions = jax.random.normal(ks, (B, S, half), jnp.float32)
    params = init_params(kp, HIDDEN, NUM_CLASSES)

    out = pooler_end_logits(hidden_states, start_positions, params)
    out = jax.block_until_ready(out)

    ref = _reference(hidden_states, start_positions, params)
    assert out.shape == (B, S, NUM_CLASSES)
    assert jnp.allclose(out, ref, atol=1e-4, rtol=1e-4), \
        float(jnp.max(jnp.abs(out - ref)))

    print("KERNEL_OK")
</pallas_src>

<mosaic_0001>
module attributes {stable_mosaic.version = 11 : i64} {
  func.func @_pooler_end_logits_kernel(%arg0: i32, %arg1: memref<8x64xf32, #tpu.memory_space<vmem>>, %arg2: memref<8x64xf32, #tpu.memory_space<vmem>>, %arg3: memref<64x128xf32, #tpu.memory_space<vmem>>, %arg4: memref<64x128xf32, #tpu.memory_space<vmem>>, %arg5: memref<1x128xf32, #tpu.memory_space<vmem>>, %arg6: memref<128x128xf32, #tpu.memory_space<vmem>>, %arg7: memref<1x128xf32, #tpu.memory_space<vmem>>, %arg8: memref<1x128xf32, #tpu.memory_space<vmem>>, %arg9: memref<128x32xf32, #tpu.memory_space<vmem>>, %arg10: memref<1x32xf32, #tpu.memory_space<vmem>>, %arg11: memref<8x32xf32, #tpu.memory_space<vmem>>) attributes {dimension_semantics = [#tpu.dimension_semantics<parallel>], iteration_bounds = array<i64: 1>, scalar_prefetch = 0 : i64, scratch_operands = 0 : i64, tpu.core_type = #tpu.core_type<tc>, window_params = [{transform_indices = @transform_0, window_bounds = array<i64: 8, 64>}, {transform_indices = @transform_1, window_bounds = array<i64: 8, 64>}, {pipeline_mode = #tpu.pipeline_mode<synchronous>, transform_indices = @transform_2, window_bounds = array<i64: 64, 128>}, {pipeline_mode = #tpu.pipeline_mode<synchronous>, transform_indices = @transform_3, window_bounds = array<i64: 64, 128>}, {pipeline_mode = #tpu.pipeline_mode<synchronous>, transform_indices = @transform_4, window_bounds = array<i64: 1, 128>}, {pipeline_mode = #tpu.pipeline_mode<synchronous>, transform_indices = @transform_5, window_bounds = array<i64: 128, 128>}, {pipeline_mode = #tpu.pipeline_mode<synchronous>, transform_indices = @transform_6, window_bounds = array<i64: 1, 128>}, {pipeline_mode = #tpu.pipeline_mode<synchronous>, transform_indices = @transform_7, window_bounds = array<i64: 1, 128>}, {pipeline_mode = #tpu.pipeline_mode<synchronous>, transform_indices = @transform_8, window_bounds = array<i64: 128, 32>}, {pipeline_mode = #tpu.pipeline_mode<synchronous>, transform_indices = @transform_9, window_bounds = array<i64: 1, 32>}, {transform_indices = @transform_10, window_bounds = array<i64: 8, 32>}]} {
    %c0 = arith.constant 0 : index
    %c0_0 = arith.constant 0 : index
    %0 = vector.load %arg1[%c0, %c0_0] : memref<8x64xf32, #tpu.memory_space<vmem>>, vector<8x64xf32>
    %c0_1 = arith.constant 0 : index
    %c0_2 = arith.constant 0 : index
    %1 = vector.load %arg2[%c0_1, %c0_2] : memref<8x64xf32, #tpu.memory_space<vmem>>, vector<8x64xf32>
    %c0_3 = arith.constant 0 : index
    %c0_4 = arith.constant 0 : index
    %2 = vector.load %arg3[%c0_3, %c0_4] : memref<64x128xf32, #tpu.memory_space<vmem>>, vector<64x128xf32>
    %cst = arith.constant dense<0.000000e+00> : vector<8x128xf32>
    %3 = tpu.matmul %0, %2, %cst {dimension_numbers = #tpu.dot_dimension_numbers<[1], [0], [0], [1], [0, 0, 1, 1], [], []>} : vector<8x64xf32>, vector<64x128xf32>, vector<8x128xf32> -> vector<8x128xf32>
    %c0_5 = arith.constant 0 : index
    %c0_6 = arith.constant 0 : index
    %4 = vector.load %arg4[%c0_5, %c0_6] : memref<64x128xf32, #tpu.memory_space<vmem>>, vector<64x128xf32>
    %cst_7 = arith.constant dense<0.000000e+00> : vector<8x128xf32>
    %5 = tpu.matmul %1, %4, %cst_7 {dimension_numbers = #tpu.dot_dimension_numbers<[1], [0], [0], [1], [0, 0, 1, 1], [], []>} : vector<8x64xf32>, vector<64x128xf32>, vector<8x128xf32> -> vector<8x128xf32>
    %6 = arith.addf %3, %5 : vector<8x128xf32>
    %c0_8 = arith.constant 0 : index
    %c0_9 = arith.constant 0 : index
    %7 = vector.load %arg5[%c0_8, %c0_9] : memref<1x128xf32, #tpu.memory_space<vmem>>, vector<1x128xf32>
    %8 = vector.broadcast %7 : vector<1x128xf32> to vector<8x128xf32>
    %9 = arith.addf %6, %8 : vector<8x128xf32>
    %10 = math.tanh %9 : vector<8x128xf32>
    %c0_10 = arith.constant 0 : index
    %c0_11 = arith.constant 0 : index
    %11 = vector.load %arg6[%c0_10, %c0_11] : memref<128x128xf32, #tpu.memory_space<vmem>>, vector<128x128xf32>
    %cst_12 = arith.constant dense<0.000000e+00> : vector<8x128xf32>
    %12 = tpu.matmul %10, %11, %cst_12 {dimension_numbers = #tpu.dot_dimension_numbers<[1], [0], [0], [1], [0, 0, 1, 1], [], []>} : vector<8x128xf32>, vector<128x128xf32>, vector<8x128xf32> -> vector<8x128xf32>
    %13 = arith.subf %10, %12 : vector<8x128xf32>
    %14 = arith.mulf %13, %13 : vector<8x128xf32>
    %c0_13 = arith.constant 0 : index
    %c0_14 = arith.constant 0 : index
    %15 = vector.load %arg6[%c0_13, %c0_14] : memref<128x128xf32, #tpu.memory_space<vmem>>, vector<128x128xf32>
    %cst_15 = arith.constant dense<0.000000e+00> : vector<8x128xf32>
    %16 = tpu.matmul %14, %15, %cst_15 {dimension_numbers = #tpu.dot_dimension_numbers<[1], [0], [0], [1], [0, 0, 1, 1], [], []>} : vector<8x128xf32>, vector<128x128xf32>, vector<8x128xf32> -> vector<8x128xf32>
    %cst_16 = arith.constant 9.99999974E-6 : f32
    %17 = vector.broadcast %cst_16 : f32 to vector<8x128xf32>
    %18 = arith.addf %16, %17 : vector<8x128xf32>
    %19 = math.rsqrt %18 : vector<8x128xf32>
    %20 = arith.mulf %13, %19 : vector<8x128xf32>
    %c0_17 = arith.constant 0 : index
    %c0_18 = arith.constant 0 : index
    %21 = vector.load %arg7[%c0_17, %c0_18] : memref<1x128xf32, #tpu.memory_space<vmem>>, vector<1x128xf32>
    %22 = vector.broadcast %21 : vector<1x128xf32> to vector<8x128xf32>
    %23 = arith.mulf %20, %22 : vector<8x128xf32>
    %c0_19 = arith.constant 0 : index
    %c0_20 = arith.constant 0 : index
    %24 = vector.load %arg8[%c0_19, %c0_20] : memref<1x128xf32, #tpu.memory_space<vmem>>, vector<1x128xf32>
    %25 = vector.broadcast %24 : vector<1x128xf32> to vector<8x128xf32>
    %26 = arith.addf %23, %25 : vector<8x128xf32>
    %c0_21 = arith.constant 0 : index
    %c0_22 = arith.constant 0 : index
    %27 = vector.load %arg9[%c0_21, %c0_22] : memref<128x32xf32, #tpu.memory_space<vmem>>, vector<128x32xf32>
    %cst_23 = arith.constant dense<0.000000e+00> : vector<8x32xf32>
    %28 = tpu.matmul %26, %27, %cst_23 {dimension_numbers = #tpu.dot_dimension_numbers<[1], [0], [0], [1], [0, 0, 1, 1], [], []>} : vector<8x128xf32>, vector<128x32xf32>, vector<8x32xf32> -> vector<8x32xf32>
    %c0_24 = arith.constant 0 : index
    %c0_25 = arith.constant 0 : index
    %29 = vector.load %arg10[%c0_24, %c0_25] : memref<1x32xf32, #tpu.memory_space<vmem>>, vector<1x32xf32>
    %30 = vector.broadcast %29 : vector<1x32xf32> to vector<8x32xf32>
    %31 = arith.addf %28, %30 : vector<8x32xf32>
    %c0_26 = arith.constant 0 : index
    %c0_27 = arith.constant 0 : index
    %32 = vector.load %arg11[%c0_26, %c0_27] : memref<8x32xf32, #tpu.memory_space<vmem>>, vector<8x32xf32>
    tpu.vector_store %arg11[%c0_26, %c0_27], %31 {strides = array<i32>} : memref<8x32xf32, #tpu.memory_space<vmem>>, vector<8x32xf32>,
    return
  }
  func.func @transform_0(%arg0: i32) -> (i32, i32) {
    %c0_i32 = arith.constant 0 : i32
    %c0_i32_0 = arith.constant 0 : i32
    return %arg0, %c0_i32 : i32, i32
  }
  func.func @transform_1(%arg0: i32) -> (i32, i32) {
    %c0_i32 = arith.constant 0 : i32
    %c0_i32_0 = arith.constant 0 : i32
    return %arg0, %c0_i32 : i32, i32
  }
  func.func @transform_2(%arg0: i32) -> (i32, i32) {
    %c0_i32 = arith.constant 0 : i32
    %c0_i32_0 = arith.constant 0 : i32
    %c0_i32_1 = arith.constant 0 : i32
    return %c0_i32, %c0_i32_0 : i32, i32
  }
  func.func @transform_3(%arg0: i32) -> (i32, i32) {
    %c0_i32 = arith.constant 0 : i32
    %c0_i32_0 = arith.constant 0 : i32
    %c0_i32_1 = arith.constant 0 : i32
    return %c0_i32, %c0_i32_0 : i32, i32
  }
  func.func @transform_4(%arg0: i32) -> (i32, i32) {
    %c0_i32 = arith.constant 0 : i32
    %c0_i32_0 = arith.constant 0 : i32
    %c0_i32_1 = arith.constant 0 : i32
    return %c0_i32, %c0_i32_0 : i32, i32
  }
  func.func @transform_5(%arg0: i32) -> (i32, i32) {
    %c0_i32 = arith.constant 0 : i32
    %c0_i32_0 = arith.constant 0 : i32
    %c0_i32_1 = arith.constant 0 : i32
    return %c0_i32, %c0_i32_0 : i32, i32
  }
  func.func @transform_6(%arg0: i32) -> (i32, i32) {
    %c0_i32 = arith.constant 0 : i32
    %c0_i32_0 = arith.constant 0 : i32
    %c0_i32_1 = arith.constant 0 : i32
    return %c0_i32, %c0_i32_0 : i32, i32
  }
  func.func @transform_7(%arg0: i32) -> (i32, i32) {
    %c0_i32 = arith.constant 0 : i32
    %c0_i32_0 = arith.constant 0 : i32
    %c0_i32_1 = arith.constant 0 : i32
    return %c0_i32, %c0_i32_0 : i32, i32
  }
  func.func @transform_8(%arg0: i32) -> (i32, i32) {
    %c0_i32 = arith.constant 0 : i32
    %c0_i32_0 = arith.constant 0 : i32
    %c0_i32_1 = arith.constant 0 : i32
    return %c0_i32, %c0_i32_0 : i32, i32
  }
  func.func @transform_9(%arg0: i32) -> (i32, i32) {
    %c0_i32 = arith.constant 0 : i32
    %c0_i32_0 = arith.constant 0 : i32
    %c0_i32_1 = arith.constant 0 : i32
    return %c0_i32, %c0_i32_0 : i32, i32
  }
  func.func @transform_10(%arg0: i32) -> (i32, i32) {
    %c0_i32 = arith.constant 0 : i32
    %c0_i32_0 = arith.constant 0 : i32
    return %arg0, %c0_i32 : i32, i32
  }
}

</mosaic_0001>

<bundles_post_ra>
// kernel: tpu_custom_call.1
= control target key start
LH: loop header
LB: loop body
LE: loop exit
PB: predicated region body
PF: predicated region fallthrough
CT: control target
= control target key end

     0   :  { %15 = vsyncpa [#allocation3], 0  ;;  %s556_s0 = inlined_call_operand.vmem [shape: f32[8,64], index: 0, kind: input, shape index: {}]   ;;  %s557_s1 = inlined_call_operand.vmem [shape: f32[8,64], index: 1, kind: input, shape index: {}]   ;;  %s558_s2 = inlined_call_operand.hbm [shape: f32[64,128], index: 2, kind: input, shape index: {}]   ;;  %s559_s3 = inlined_call_operand.hbm [shape: f32[64,128], index: 3, kind: input, shape index: {}]   ;;  %s560_s4 = inlined_call_operand.vmem [shape: f32[1,128], index: 4, kind: input, shape index: {}]   ;;  %s561_s5 = inlined_call_operand.vmem [shape: f32[128,128], index: 5, kind: input, shape index: {}]   ;;  %s562_s6 = inlined_call_operand.vmem [shape: f32[1,128], index: 6, kind: input, shape index: {}]   ;;  %s563_s7 = inlined_call_operand.vmem [shape: f32[1,128], index: 7, kind: input, shape index: {}]   ;;  %s564_s8 = inlined_call_operand.vmem [shape: f32[128,32], index: 8, kind: input, shape index: {}]   ;;  %s565_s9 = inlined_call_operand.vmem [shape: f32[1,32], index: 9, kind: input, shape index: {}]   ;;  %s566_s10 = inlined_call_operand.hbm [shape: f32[8,32], index: 10, kind: output, shape index: {}]  }
   0x1   :  { %16 = vsyncpa [#allocation6], 0 }
   0x2   :  { %17 = vsyncpa [#allocation4], 0  ;;  %s26_s15 = sshll.u32 %s558_s2, 4  ;;  %s371_s16 = smov [#allocation2]   ;;  %s27_s15 = int_to_ptr.hbm [resolvable:$true] %s26_s15 }
   0x3   :  { %s28_s17 = sshll.u32 %s371_s16, 4  ;;  %s39_s20 = sshll.u32 %s559_s3, 4  ;;  %s29_s17 = int_to_ptr.vmem [resolvable:$true] %s28_s17  ;;  %s40_s20 = int_to_ptr.hbm [resolvable:$true] %s39_s20 }
   0x4   :  { %s372_s21 = smov 128   ;;  %s373_s22 = smov 8  }
   0x5   :  { %34 = dma.hbm_to_vmem [thread:$0]  %s27_s15, 1024, %s29_s17, [#allocation3], %s372_s21, %s372_s21, %s373_s22  }
   0x6   :  { %s374_s23 = smov [#allocation5]  }
   0x7   :  { %s41_s24 = sshll.u32 %s374_s23, 4  ;;  %s42_s24 = int_to_ptr.vmem [resolvable:$true] %s41_s24 }
   0x8   :  { %47 = dma.hbm_to_vmem [thread:$0]  %s40_s20, 1024, %s42_s24, [#allocation6], %s372_s21, %s372_s21, %s373_s22  }
   0x9   :  { %365 = dma.done.wait [#allocation3], 1024  }
   0xa   :  { %366 = vsyncadd [#allocation3], 4294966272 }
   0xb   :  { %367 = dma.done.wait [#allocation6], 1024  }
   0xc   :  { %368 = vsyncadd [#allocation6], 4294966272  ;;  %v85_v0 = vld [vmem:[#allocation5 + $0x38] sm:$0xff]  ;;  %v84_v1 = vld [vmem:[#allocation5 + $0x30] sm:$0xff]  ;;  %vm86_vm0 = vcmask 523264   ;;  %s375_s24 = smov [#allocation7]  }
   0xd   :  { %98 = vmatpush.msra.mxu1 %v85_v0  ;;  %v83_v2 = vld [vmem:[#allocation5 + $0x28] sm:$0xff]  ;;  %v82_v3 = vld [vmem:[#allocation5 + $0x20] sm:$0xff]  ;;  %v81_v4 = vld [vmem:[#allocation5 + $0x18] sm:$0xff]  ;;  %s265_s2 = sshll.u32 %s375_s24, 4  ;;  %s267_s26 = sshll.u32 %s566_s10, 4  ;;  %vm258_vm4 = vcmask 261120   ;;  %s266_s2 = int_to_ptr.vmem [resolvable:$true] %s265_s2  ;;  %s268_s26 = int_to_ptr.hbm [resolvable:$true] %s267_s26 }
   0xe   :  { %v154_v5 = vld [vmem:[%s561_s5 + $0x78] sm:$0xff]  ;;  %v153_v6 = vld [vmem:[%s561_s5 + $0x70] sm:$0xff]  ;;  %v152_v8 = vld [vmem:[%s561_s5 + $0x68] sm:$0xff] }
   0xf   :  { %99 = vmatpush.msra.mxu1 %v84_v1  ;;  %v80_v7 = vld [vmem:[#allocation5 + $0x10] sm:$0xff]  ;;  %155 = vmatpush.msra.mxu2 %v154_v5  ;;  %v79_v9 = vld [vmem:[#allocation5 + $0x8] sm:$0xff]  ;;  %v151_v10 = vld [vmem:[%s561_s5 + $0x60] sm:$0xff] }
  0x10   :  { %177 = vmatpush.msra.mxu3 %v154_v5  ;;  %v78_v11 = vld [vmem:[#allocation5] sm:$0xff]  ;;  %v150_v12 = vld [vmem:[%s561_s5 + $0x58] sm:$0xff]  ;;  %v149_v15 = vld [vmem:[%s561_s5 + $0x50] sm:$0xff] }
  0x11   :  { %100 = vmatpush.msra.mxu1 %v83_v2  ;;  %156 = vmatpush.msra.mxu2 %v153_v6  ;;  %v77_v13 = vld [vmem:[#allocation2 + $0x38] sm:$0xff]  ;;  %v69_v14 = vld [vmem:[%s557_s1] sm:$0xff]  ;;  %v76_v16 = vld [vmem:[#allocation2 + $0x30] sm:$0xff] }
  0x12   :  { %178 = vmatpush.msra.mxu3 %v153_v6  ;;  %v75_v17 = vld [vmem:[#allocation2 + $0x28] sm:$0xff]  ;;  %v74_v18 = vld [vmem:[#allocation2 + $0x20] sm:$0xff]  ;;  %v73_v19 = vld [vmem:[#allocation2 + $0x18] sm:$0xff] }
  0x13   :  { %101 = vmatpush.msra.mxu1 %v82_v3  ;;  %157 = vmatpush.msra.mxu2 %v152_v8  ;;  %v72_v20 = vld [vmem:[#allocation2 + $0x10] sm:$0xff]  ;;  %v71_v21 = vld [vmem:[#allocation2 + $0x8] sm:$0xff]  ;;  %v70_v22 = vld [vmem:[#allocation2] sm:$0xff] }
  0x14   :  { %179 = vmatpush.msra.mxu3 %v152_v8  ;;  %v68_v23 = vld [vmem:[%s556_s0] sm:$0xff]  ;;  %v148_v24 = vld [vmem:[%s561_s5 + $0x48] sm:$0xff]  ;;  %v146_v26 = vld [vmem:[%s561_s5 + $0x38] sm:$0xff] }
  0x15   :  { %102 = vmatpush.msra.mxu1 %v81_v4  ;;  %158 = vmatpush.msra.mxu2 %v151_v10  ;;  %v147_v25 = vld [vmem:[%s561_s5 + $0x40] sm:$0xff]  ;;  %v145_v27 = vld [vmem:[%s561_s5 + $0x30] sm:$0xff]  ;;  %v144_v28 = vld [vmem:[%s561_s5 + $0x28] sm:$0xff] }
  0x16   :  { %180 = vmatpush.msra.mxu3 %v151_v10  ;;  %v143_v29 = vld [vmem:[%s561_s5 + $0x20] sm:$0xff]  ;;  %v142_v30 = vld [vmem:[%s561_s5 + $0x18] sm:$0xff]  ;;  %v141_v31 = vld [vmem:[%s561_s5 + $0x10] sm:$0xff] }
  0x17   :  { %103 = vmatpush.msra.mxu1 %v80_v7  ;;  %159 = vmatpush.msra.mxu2 %v150_v12  ;;  %v140_v32 = vld [vmem:[%s561_s5 + $0x8] sm:$0xff]  ;;  %v139_v33 = vld [vmem:[%s561_s5] sm:$0xff]  ;;  %v233_v40 = vld [vmem:[%s564_s8 + $0x78] sm:$0xff] }
  0x18   :  { %181 = vmatpush.msra.mxu3 %v150_v12  ;;  %v285_v35 = vld [vmem:[%s560_s4] ss:$0 sm:$0xff]  ;;  %v232_v41 = vld [vmem:[%s564_s8 + $0x70] sm:$0xff]  ;;  %238 = vmatpush.msra.mxu0 %v233_v40  ;;  %v231_v45 = vld [vmem:[%s564_s8 + $0x68] sm:$0xff] }
  0x19   :  { %104 = vmatpush.msra.mxu1 %v79_v9  ;;  %160 = vmatpush.msra.mxu2 %v149_v15  ;;  %v230_v46 = vld [vmem:[%s564_s8 + $0x60] sm:$0xff]  ;;  %v229_v47 = vld [vmem:[%s564_s8 + $0x58] sm:$0xff]  ;;  %v228_v48 = vld [vmem:[%s564_s8 + $0x50] sm:$0xff] }
  0x1a   :  { %182 = vmatpush.msra.mxu3 %v149_v15  ;;  %239 = vmatpush.msra.mxu0 %v232_v41  ;;  %v227_v49 = vld [vmem:[%s564_s8 + $0x48] sm:$0xff]  ;;  %v226_v50 = vld [vmem:[%s564_s8 + $0x40] sm:$0xff]  ;;  %v225_v51 = vld [vmem:[%s564_s8 + $0x38] sm:$0xff] }
  0x1b   :  { %105 = vmatpush.msra.mxu1 %v78_v11  ;;  %161 = vmatpush.msra.mxu2 %v148_v24  ;;  %v224_v52 = vld [vmem:[%s564_s8 + $0x30] sm:$0xff]  ;;  %v223_v53 = vld [vmem:[%s564_s8 + $0x28] sm:$0xff]  ;;  %v222_v54 = vld [vmem:[%s564_s8 + $0x20] sm:$0xff] }
  0x1c   :  { %278 = vmatmul.msk.f32.vlgmr.msra.gmra.mxu1 %vm86_vm0, %v69_v14  ;;  %183 = vmatpush.msra.mxu3 %v148_v24  ;;  %v221_v55 = vld [vmem:[%s564_s8 + $0x18] sm:$0xff]  ;;  %v220_v56 = vld [vmem:[%s564_s8 + $0x10] sm:$0xff]  ;;  %v219_v57 = vld [vmem:[%s564_s8 + $0x8] sm:$0xff] }
  0x1d   :  { %121 = vmatpush.msrb.mxu1 %v77_v13  ;;  %162 = vmatpush.msra.mxu2 %v147_v25  ;;  %v218_v58 = vld [vmem:[%s564_s8] sm:$0xff] }
  0x1e   :  { %184 = vmatpush.msra.mxu3 %v147_v25  ;;  %240 = vmatpush.msra.mxu0 %v231_v45  ;;  %v286_v3 = vld [vmem:[%s562_s6] ss:$0 sm:$0xff] }
  0x1f   :  { %122 = vmatpush.msrb.mxu1 %v76_v16  ;;  %163 = vmatpush.msra.mxu2 %v146_v26  ;;  %v287_v6 = vld [vmem:[%s563_s7] ss:$0 sm:$0xff] }
  0x20   :  { %185 = vmatpush.msra.mxu3 %v146_v26  ;;  %241 = vmatpush.msra.mxu0 %v230_v46  ;;  %v288_v9 = vld [vmem:[%s565_s9] ss:$0 sm:$0xff] }
  0x21   :  { %123 = vmatpush.msrb.mxu1 %v75_v17  ;;  %164 = vmatpush.msra.mxu2 %v145_v27 }
  0x22   :  { %186 = vmatpush.msra.mxu3 %v145_v27  ;;  %242 = vmatpush.msra.mxu0 %v229_v47 }
  0x23   :  { %124 = vmatpush.msrb.mxu1 %v74_v18  ;;  %165 = vmatpush.msra.mxu2 %v144_v28 }
  0x24   :  { %187 = vmatpush.msra.mxu3 %v144_v28  ;;  %243 = vmatpush.msra.mxu0 %v228_v48 }
  0x25   :  { %125 = vmatpush.msrb.mxu1 %v73_v19  ;;  %166 = vmatpush.msra.mxu2 %v143_v29 }
  0x26   :  { %188 = vmatpush.msra.mxu3 %v143_v29  ;;  %244 = vmatpush.msra.mxu0 %v227_v49 }
  0x27   :  { %126 = vmatpush.msrb.mxu1 %v72_v20  ;;  %167 = vmatpush.msra.mxu2 %v142_v30 }
  0x28   :  { %189 = vmatpush.msra.mxu3 %v142_v30  ;;  %245 = vmatpush.msra.mxu0 %v226_v50 }
  0x29   :  { %127 = vmatpush.msrb.mxu1 %v71_v21  ;;  %168 = vmatpush.msra.mxu2 %v141_v31 }
  0x2a   :  { %190 = vmatpush.msra.mxu3 %v141_v31  ;;  %246 = vmatpush.msra.mxu0 %v225_v51 }
  0x2b   :  { %128 = vmatpush.msrb.mxu1 %v70_v22  ;;  %169 = vmatpush.msra.mxu2 %v140_v32 }
  0x2c   :  { %279 = vmatmul.msk.f32.vlgmr.msrb.gmra.mxu1 %vm86_vm0, %v68_v23  ;;  %191 = vmatpush.msra.mxu3 %v140_v32 }
  0x2d   :  { %170 = vmatpush.msra.mxu2 %v139_v33  ;;  %247 = vmatpush.msra.mxu0 %v224_v52 }
  0x2e   :  { %192 = vmatpush.msra.mxu3 %v139_v33 }
  0x2f   :  { %248 = vmatpush.msra.mxu0 %v223_v53 }
  0x31   :  { %249 = vmatpush.msra.mxu0 %v222_v54 }
  0x33   :  { %250 = vmatpush.msra.mxu0 %v221_v55 }
  0x35   :  { %251 = vmatpush.msra.mxu0 %v220_v56 }
  0x37   :  { %252 = vmatpush.msra.mxu0 %v219_v57 }
  0x39   :  { %253 = vmatpush.msra.mxu0 %v218_v58 }
  0x99   :  { %v107_v34 = vpop.f32.mrf.mxu1 }
  0xa9   :  { %v130_v36 = vpop.f32.mrf.mxu1 }
  0xaa   :  { %v131_v37 = vadd.f32 %v130_v36, %v107_v34 }
  0xac   :  { %v137_v38 = vadd.f32 %v285_v35, %v131_v37 }
  0xae   :  { %289 = vtanh.f32 %v137_v38 }
  0xb4   :  { %v290_v39 = vpop.eup %289 }
  0xb5   :  { %171 = vmatmul.f32.vlgmr.msra.gmra.mxu2 %v290_v39 }
 0x138   :  { %v172_v42 = vpop.f32.mrf.mxu2 }
 0x139   :  { %v175_v43 = vsub.f32 %v290_v39, %v172_v42 }
 0x13b   :  { %v176_v44 = vmul.f32 %v175_v43, %v175_v43 }
 0x13d   :  { %193 = vmatmul.f32.vlgmr.msra.gmra.mxu3 %v176_v44 }
 0x1c0   :  { %v194_v59 = vpop.f32.mrf.mxu3 }
 0x1c1   :  { %v195_v60 = vadd.f32 1e-05, %v194_v59 }
 0x1c3   :  { %291 = vrsqrt.f32 %v195_v60  ;;  %vm203_vm2 = vweird.f32 %v195_v60 }
 0x1c9   :  { %v292_v61 = vpop.eup %291 }
 0x1ca   :  { %v198_v62 = vmul.f32 %v292_v61, %v195_v60  ;;  %vm204_vm1 = vweird.f32 %v292_v61 }
 0x1cb   :  { %vm205_vm3 = vmor %vm203_vm2, %vm204_vm1 }
 0x1cc   :  { %v199_v63 = vmul.f32 %v292_v61, %v198_v62 }
 0x1ce   :  { %v200_v0 = vmul.f32 0.5, %v199_v63 }
 0x1d0   :  { %v201_v1 = vsub.f32 1.5, %v200_v0 }
 0x1d2   :  { %v202_v2 = vmul.f32 %v292_v61, %v201_v1 }
 0x1d4   :  { %v206_v4 = vsel %vm205_vm3, %v292_v61, %v202_v2 }
 0x1d5   :  { %v207_v5 = vmul.f32 %v206_v4, %v175_v43 }
 0x1d7   :  { %v212_v7 = vmul.f32 %v286_v3, %v207_v5 }
 0x1d9   :  { %v217_v8 = vadd.f32 %v287_v6, %v212_v7 }
 0x1db   :  { %254 = vmatmul.f32.vlgmr.msra.gmra.mxu0 %v217_v8 }
 0x258   :  { %v255_v10 = vpop.f32.mrf.mxu0 }
 0x259   :  { %v256_v11 = vadd.f32 %v288_v9, %v255_v10 }
 0x25b   :  { %259 = vst.msk [vmem:[#allocation7] sm:$0xff] %vm258_vm4, %v256_v11 }
 0x25c   :  { %270 = dma.vmem_to_hbm [thread:$0]  %s266_s2, 128, %s268_s26, [#allocation4]  }
 0x25d   :  { %369 = dma.done.wait [#allocation4], 128  }
 0x25e   :  { %370 = vsyncadd [#allocation4], 4294967168 }
 0x25f   :  { %275 = vsyncpa [#allocation3], 1 }
 0x260   :  { %276 = vsyncpa [#allocation6], 1 }
 0x261   :  { %277 = vsyncpa [#allocation4], 1 }

</bundles_post_ra>
